<compile_context>
chip_gen: v7x
topology: tpu7x:2x2x1
jax: 0.10.0
libtpu: 0.0.40
codegen_flags: <defaults>
</compile_context>

<pallas_src>
import jax
import jax.numpy as jnp
from jax.experimental import pallas as pl
from jax.experimental.pallas import tpu as pltpu


def _round_up(a: int, b: int) -> int:
    return (a + b - 1) // b * b


def _target_block_bytes() -> int:
    """Per-generation streaming block target (bigger on higher-BW parts)."""
    try:
        kind = jax.devices()[0].device_kind.lower()
    except Exception:
        return 2 * 1024 * 1024
    if "v7" in kind:
        return 8 * 1024 * 1024   # ~3.2 TB/s/TC: amortize ~0.35us/step overhead
    if "v6" in kind:
        return 4 * 1024 * 1024   # ~1.4 TB/s, 32 MiB scoped-VMEM default
    return 2 * 1024 * 1024       # v5e (16 MiB scoped default) and older


def _fast_normalize_kernel(g_ref, x_ref, o_ref):
    # g_ref: (ROWS, 1) f32 VMEM column; x_ref / o_ref: (ROWS, L) VMEM tile.
    # fp32 multiply with lane-broadcast of the per-row scale, cast to out dtype.
    o_ref[...] = (g_ref[...] * x_ref[...].astype(jnp.float32)).astype(o_ref.dtype)


def fast_normalize(x: jax.Array, gamma: jax.Array) -> jax.Array:
    """x: (N, C, H, W); gamma: (1, C, 1, 1). Returns gamma * x (same dtype as x)."""
    N, C, H, W = x.shape
    R = N * C            # rows of the flattened problem
    L = H * W            # lanes of the flattened problem (full array dim -> no lane pad)
    itemsize = jnp.dtype(x.dtype).itemsize

    # Free (metadata-only) reshape: NCHW is row-major contiguous over (H, W).
    x2 = x.reshape(R, L)

    # Sublane tile for packed dtypes: 8 rows (f32), 16 (bf16), 32 (int8/fp8).
    tile = 8 * max(1, 4 // itemsize)

    # Row-block size: biggest dtype-tile multiple within the per-buffer target.
    target_bytes = _target_block_bytes()
    max_rows_by_vmem = max(tile, (target_bytes // max(1, L * itemsize)) // tile * tile)
    rows_block = min(_round_up(R, tile), max_rows_by_vmem)
    # Megacore (v7x): if one block would cover everything but R is big enough,
    # split into >=2 grid steps so the "parallel" axis can shard across 2 TCs.
    if rows_block >= R and R > 2 * tile:
        rows_block = _round_up(pl.cdiv(R, 2), tile)
    rows_block = int(max(tile, rows_block))

    grid = (pl.cdiv(R, rows_block),)   # trailing partial block handled by Pallas

    # gamma as a per-row fp32 column (broadcast over batch); tiny HBM footprint.
    g_col = jnp.broadcast_to(gamma.reshape(1, C).astype(jnp.float32), (N, C)).reshape(R, 1)

    # Double-buffered footprint: 2 x-buffers + 2 out-buffers + 2 gamma columns.
    block_bytes = rows_block * L * itemsize
    vmem_needed = 4 * block_bytes + 2 * rows_block * 4
    vmem_limit = int(min(max(vmem_needed + (8 << 20), 32 << 20), 48 << 20))

    out2 = pl.pallas_call(
        _fast_normalize_kernel,
        out_shape=jax.ShapeDtypeStruct((R, L), x.dtype),
        grid=grid,
        in_specs=[
            pl.BlockSpec((rows_block, 1), lambda i: (i, 0)),    # gamma column (f32)
            pl.BlockSpec((rows_block, L), lambda i: (i, 0)),    # x rows, full lane width
        ],
        out_specs=pl.BlockSpec((rows_block, L), lambda i: (i, 0)),
        compiler_params=pltpu.CompilerParams(
            dimension_semantics=("parallel",),
            vmem_limit_bytes=vmem_limit,
        ),
        cost_estimate=pl.CostEstimate(
            flops=R * L,
            transcendentals=0,
            bytes_accessed=2 * R * L * itemsize + R * 4,
        ),
    )(g_col, x2)

    return out2.reshape(N, C, H, W)


if __name__ == "__main__":
    key = jax.random.PRNGKey(0)
    N, C, H, W = 2, 4, 16, 16

    x = jax.random.normal(key, (N, C, H, W), dtype=jnp.float32)

    # PyTorch initializes gamma = ones(1, C, 1, 1); perturb deterministically so
    # the test exercises real per-channel broadcasting.
    gamma = jnp.ones((1, C, 1, 1), dtype=jnp.float32)
    gamma = gamma * (1.0 + 0.1 * jnp.arange(C, dtype=jnp.float32)).reshape(1, C, 1, 1)

    out = fast_normalize(x, gamma)
    jax.block_until_ready(out)

    ref = gamma * x  # pure-JAX reference of the PyTorch forward
    assert out.shape == x.shape and out.dtype == x.dtype
    assert jnp.allclose(out, ref, atol=1e-6, rtol=1e-6)

    print("KERNEL_OK")
</pallas_src>

<mosaic_0001>
module attributes {stable_mosaic.version = 11 : i64} {
  func.func @_fast_normalize_kernel(%arg0: i32, %arg1: memref<8x1xf32, #tpu.memory_space<vmem>>, %arg2: memref<8x256xf32, #tpu.memory_space<vmem>>, %arg3: memref<8x256xf32, #tpu.memory_space<vmem>>) attributes {dimension_semantics = [#tpu.dimension_semantics<parallel>], iteration_bounds = array<i64: 1>, scalar_prefetch = 0 : i64, scratch_operands = 0 : i64, tpu.core_type = #tpu.core_type<tc>, window_params = [{transform_indices = @transform_0, window_bounds = array<i64: 8, 1>}, {transform_indices = @transform_1, window_bounds = array<i64: 8, 256>}, {transform_indices = @transform_2, window_bounds = array<i64: 8, 256>}]} {
    %c0 = arith.constant 0 : index
    %c0_0 = arith.constant 0 : index
    %0 = vector.load %arg1[%c0, %c0_0] : memref<8x1xf32, #tpu.memory_space<vmem>>, vector<8x1xf32>
    %c0_1 = arith.constant 0 : index
    %c0_2 = arith.constant 0 : index
    %1 = vector.load %arg2[%c0_1, %c0_2] : memref<8x256xf32, #tpu.memory_space<vmem>>, vector<8x256xf32>
    %2 = vector.broadcast %0 : vector<8x1xf32> to vector<8x256xf32>
    %3 = arith.mulf %2, %1 : vector<8x256xf32>
    %c0_3 = arith.constant 0 : index
    %c0_4 = arith.constant 0 : index
    %4 = vector.load %arg3[%c0_3, %c0_4] : memref<8x256xf32, #tpu.memory_space<vmem>>, vector<8x256xf32>
    tpu.vector_store %arg3[%c0_3, %c0_4], %3 {strides = array<i32>} : memref<8x256xf32, #tpu.memory_space<vmem>>, vector<8x256xf32>,
    return
  }
  func.func @transform_0(%arg0: i32) -> (i32, i32) {
    %c0_i32 = arith.constant 0 : i32
    %c0_i32_0 = arith.constant 0 : i32
    return %arg0, %c0_i32 : i32, i32
  }
  func.func @transform_1(%arg0: i32) -> (i32, i32) {
    %c0_i32 = arith.constant 0 : i32
    %c0_i32_0 = arith.constant 0 : i32
    return %arg0, %c0_i32 : i32, i32
  }
  func.func @transform_2(%arg0: i32) -> (i32, i32) {
    %c0_i32 = arith.constant 0 : i32
    %c0_i32_0 = arith.constant 0 : i32
    return %arg0, %c0_i32 : i32, i32
  }
}

</mosaic_0001>

<bundles_post_ra>
// kernel: tpu_custom_call.1
= control target key start
LH: loop header
LB: loop body
LE: loop exit
PB: predicated region body
PF: predicated region fallthrough
CT: control target
= control target key end

     0   :  { %7 = vsyncpa [#allocation3], 0  ;;  %s148_s0 = inlined_call_operand.vmem [shape: f32[8,1], index: 0, kind: input, shape index: {}]   ;;  %s149_s1 = inlined_call_operand.hbm [shape: f32[8,256], index: 1, kind: input, shape index: {}]   ;;  %s150_s2 = inlined_call_operand.hbm [shape: f32[8,256], index: 2, kind: output, shape index: {}]  }
   0x1   :  { %8 = vsyncpa [#allocation4], 0  ;;  %s103_s9 = smov [#allocation2]   ;;  %s55_s13 = scalar_lea.hbm %s149_s1, 256 }
   0x2   :  { %s17_s10 = sshll.u32 %s103_s9, 4  ;;  %p56_p0 = scmp.ne.s32.totalorder %s149_s1, %s55_s13  ;;  %s18_s10 = int_to_ptr.vmem [resolvable:$true] %s17_s10 }
   0x3   :  { %p59_p1 = scmp.lt.u32.totalorder %s55_s13, %s149_s1 }
   0x5   :  { %p61_p2 = pnand %p59_p1, %p56_p0 }
   0x7   :  { %64 = shalt.err (!%p61_p2)
}
   0x8   :  { %s65_s18 = scalar_lea.vmem %s18_s10, 256  ;;  %p70_p4 = scmp.lt.s32.totalorder %s18_s10, %s18_s10 }
   0x9   :  { %p66_p3 = scmp.ne.s32.totalorder %s18_s10, %s65_s18  ;;  %p71_p5 = scmp.lt.s32.totalorder %s65_s18, %s65_s18 }
   0xb   :  { %p72_p6 = por %p71_p5, %p70_p4 }
   0xd   :  { %p73_p7 = pnand %p72_p6, %p66_p3 }
   0xf   :  { %76 = shalt.err (!%p73_p7)
}
  0x10   :  { %20 = dma.hbm_to_vmem [thread:$0]  %s149_s1, 256, %s18_s10, [#allocation3]  }
  0x11   :  { %99 = dma.done.wait [#allocation3], 256  }
  0x12   :  { %100 = vsyncadd [#allocation3], 4294967040  ;;  %v104_v0 = vmov 0   ;;  %v24_v1 = vld [vmem:[%s148_s0] sm:$0xff]  ;;  %v26_v3 = vld [vmem:[#allocation2 + $0x8] sm:$0xff]  ;;  %s105_s23 = smov [#allocation5]  }
  0x13   :  { %54 = vset.pattern.permute.xlu0 %v104_v0  ;;  %v25_v2 = vld [vmem:[#allocation2] sm:$0xff]  ;;  %s42_s24 = sshll.u32 %s105_s23, 4  ;;  %s43_s24 = int_to_ptr.vmem [resolvable:$true] %s42_s24 }
  0x14   :  { %29 = vperm.xlu0 %54, %v24_v1   ;;  %s77_s1 = scalar_lea.vmem %s43_s24, 256  ;;  %p82_p9 = scmp.lt.s32.totalorder %s43_s24, %s43_s24 }
  0x15   :  { %p78_p8 = scmp.ne.s32.totalorder %s43_s24, %s77_s1  ;;  %p83_p10 = scmp.lt.s32.totalorder %s77_s1, %s77_s1 }
  0x17   :  { %p84_p11 = por %p83_p10, %p82_p9 }
  0x19   :  { %p85_p12 = pnand %p84_p11, %p78_p8 }
  0x93   :  { %v30_v4 = vpop.permute.xlu0 %29 }
  0x94   :  { %v32_v5 = vmul.f32 %v30_v4, %v25_v2  ;;  %v33_v6 = vmul.f32 %v30_v4, %v26_v3 }
  0x96   :  { %34 = vst [vmem:[#allocation5] sm:$0xff] %v32_v5  ;;  %35 = vst [vmem:[#allocation5 + $0x8] sm:$0xff] %v33_v6 }
  0x97   :  { %88 = shalt.err (!%p85_p12)
}
  0x98   :  { %s89_s26 = scalar_lea.hbm %s150_s2, 256 }
  0x99   :  { %p90_p13 = scmp.ne.s32.totalorder %s150_s2, %s89_s26  ;;  %p93_p0 = scmp.lt.u32.totalorder %s89_s26, %s150_s2 }
  0x9b   :  { %p95_p1 = pnand %p93_p0, %p90_p13 }
  0x9d   :  { %98 = shalt.err (!%p95_p1)
}
  0x9e   :  { %45 = dma.vmem_to_hbm [thread:$0]  %s43_s24, 256, %s150_s2, [#allocation4]  }
  0x9f   :  { %101 = dma.done.wait [#allocation4], 256  }
  0xa0   :  { %102 = vsyncadd [#allocation4], 4294967040 }
  0xa1   :  { %49 = vsyncpa [#allocation3], 1 }
  0xa2   :  { %50 = vsyncpa [#allocation4], 1 }

</bundles_post_ra>
